<compile_context>
chip_gen: v7x
topology: tpu7x:2x2x1
jax: 0.10.0
libtpu: 0.0.40
codegen_flags: <defaults>
</compile_context>

<pallas_src>
import functools

import jax
import jax.numpy as jnp
from jax.experimental import pallas as pl
from jax.experimental.pallas import tpu as pltpu


_LANE = 128


def _round_up(x, m):
    return ((x + m - 1) // m) * m


def _tower_kernel(x_ref, w1_ref, b1_ref, w2_ref, b2_ref, out_ref, *,
                  binary, mm_dtype):
    # fc1: (TB, In) @ (In, H).  Operands in mm_dtype (bf16 by default), f32
    # accumulation on the MXU.
    h = jnp.dot(x_ref[...].astype(mm_dtype), w1_ref[...].astype(mm_dtype),
                preferred_element_type=jnp.float32)
    # bias + ReLU in f32 (v5e has no bf16 VPU).
    h = jnp.maximum(h + b1_ref[...].astype(jnp.float32), 0.0)
    # Dropout(0.4) in eval mode == identity.
    # fc2: operands in mm_dtype, f32 accumulation.
    o = jnp.dot(h.astype(mm_dtype), w2_ref[...].astype(mm_dtype),
                preferred_element_type=jnp.float32)
    o = o + b2_ref[...].astype(jnp.float32)
    if binary:
        o = jax.nn.sigmoid(o)
    out_ref[...] = o.astype(out_ref.dtype)


def tower_forward(x, w1, b1, w2, b2, *, task_type,
                  matmul_dtype=jnp.bfloat16, block_b=None):
    """Eval-mode forward of `Tower`.

    x : [B, In]; w1: [In, H]; b1: [H]; w2: [H, Out]; b2: [Out].
    """
    B, In = x.shape
    In_w, H = w1.shape
    assert In_w == In
    H_w, Out = w2.shape
    assert H_w == H
    binary = (task_type == "binary")
    mm_dtype = jnp.dtype(matmul_dtype)

    # ---- lane-padding-aware per-row VMEM footprint -------------------------
    # In VMEM the x tile [block_b, In] and out tile [block_b, Out] occupy
    # round_up(·,128) lanes and are double-buffered by the pipeline; the kernel
    # intermediates (mm_dtype copies of x and h, f32 h and o) also scale with
    # block_b, so count them all before picking the tile size.
    x_it = x.dtype.itemsize
    mm_it = mm_dtype.itemsize
    in_lanes = _round_up(In, _LANE)
    hid_lanes = _round_up(H, _LANE)
    out_lanes = _round_up(Out, _LANE)
    row_tiles = 2 * (in_lanes * x_it + out_lanes * x_it)          # double-buffered IO
    row_interm = (in_lanes * mm_it                                 # x cast for fc1
                  + hid_lanes * (4 + mm_it)                        # h (f32) + h cast
                  + out_lanes * 4)                                 # o (f32)
    per_row_bytes = row_tiles + row_interm

    # Tile budget: 40 MiB keeps the kernel comfortably inside v7x's 64 MiB VMEM
    # per TensorCore (and trivially inside v5e/v6e's 128 MiB).
    TILE_BUDGET = 40 << 20
    max_block_b = max(8, (TILE_BUDGET // per_row_bytes) // 8 * 8)

    # ---- batch tile selection ----------------------------------------------
    # Big tiles amortise the ~0.35 us/step pipeline overhead; keep >= 4 grid
    # steps when B is large enough so both v7x TensorCores get work.
    if block_b is None:
        block_b = min(8192, _round_up(pl.cdiv(B, 4), 8))
    block_b = max(8, _round_up(block_b, 8))
    block_b = min(block_b, max_block_b)

    # Ragged last block is handled by Pallas (masked input DMA / output
    # writeback): no jnp.pad of x, no out[:B] slice copy.
    n_blocks = pl.cdiv(B, block_b)

    # Biases as (1, N) so they broadcast over the batch tile.
    b1_2d = b1.reshape(1, H)
    b2_2d = b2.reshape(1, Out)

    # Explicit VMEM limit: tiles + intermediates + (double-buffered, lane- and
    # sublane-padded) weights + margin; clamped to [16, 48] MiB so it is valid
    # on every generation.
    p_it = w1.dtype.itemsize
    weight_bytes = 2 * p_it * (
        _round_up(In, 8) * hid_lanes + 8 * hid_lanes +
        _round_up(H, 8) * out_lanes + 8 * out_lanes)
    vmem_limit = int(per_row_bytes * block_b + weight_bytes + (8 << 20))
    vmem_limit = int(min(max(vmem_limit, 16 << 20), 48 << 20))

    kernel = functools.partial(_tower_kernel, binary=binary, mm_dtype=mm_dtype)

    def const_spec(shape):
        # Grid-invariant operand: constant index_map, so Pallas never re-DMAs
        # it after the first grid step.
        return pl.BlockSpec(shape, lambda i: (0,) * len(shape))

    return pl.pallas_call(
        kernel,
        out_shape=jax.ShapeDtypeStruct((B, Out), x.dtype),
        grid=(n_blocks,),
        in_specs=[
            pl.BlockSpec((block_b, In), lambda i: (i, 0)),   # x tile
            const_spec((In, H)),                              # w1 (resident)
            const_spec((1, H)),                               # b1
            const_spec((H, Out)),                             # w2 (resident)
            const_spec((1, Out)),                             # b2
        ],
        out_specs=pl.BlockSpec((block_b, Out), lambda i: (i, 0)),
        compiler_params=pltpu.CompilerParams(
            dimension_semantics=("parallel",),
            vmem_limit_bytes=vmem_limit),
    )(x, w1, b1_2d, w2, b2_2d)


def tower_reference(x, w1, b1, w2, b2, *, task_type):
    h = jnp.maximum(x @ w1 + b1, 0.0)
    o = h @ w2 + b2
    if task_type == "binary":
        o = jax.nn.sigmoid(o)
    return o


if __name__ == "__main__":
    # Shapes consistent with Tower(input_size=32, output_size=4,
    # task_type='binary', hidden_size=16).  NOTE: at these toy sizes plain XLA
    # would beat any Pallas kernel; the kernel earns its keep at large batch.
    IN, HID, OUT = 32, 16, 4

    key = jax.random.PRNGKey(0)
    kx, kx2, k1, k2, k3, k4 = jax.random.split(key, 6)

    # Deterministic synthetic parameters (nn.Linear weights stored as [in, out]).
    w1 = jax.random.normal(k1, (IN, HID), dtype=jnp.float32) * 0.1
    b1 = jax.random.normal(k2, (HID,), dtype=jnp.float32) * 0.1
    w2 = jax.random.normal(k3, (HID, OUT), dtype=jnp.float32) * 0.1
    b2 = jax.random.normal(k4, (OUT,), dtype=jnp.float32) * 0.1

    # Check 1: small batch, default bf16-operand matmuls (f32 accumulation).
    B = 16
    x = jax.random.normal(kx, (B, IN), dtype=jnp.float32)
    out = jax.block_until_ready(
        tower_forward(x, w1, b1, w2, b2, task_type="binary"))
    ref = tower_reference(x, w1, b1, w2, b2, task_type="binary")
    assert out.shape == (B, OUT)
    assert jnp.allclose(out, ref, atol=2e-2, rtol=2e-2), "mismatch vs reference (B=16, bf16)"

    # Check 2: ragged batch -> multi-step grid with a partial last block
    # (no jnp.pad of x, no output slice copy).
    B2 = 300
    x2 = jax.random.normal(kx2, (B2, IN), dtype=jnp.float32)
    out2 = jax.block_until_ready(
        tower_forward(x2, w1, b1, w2, b2, task_type="binary"))
    ref2 = tower_reference(x2, w1, b1, w2, b2, task_type="binary")
    assert out2.shape == (B2, OUT)
    assert jnp.allclose(out2, ref2, atol=2e-2, rtol=2e-2), "mismatch vs reference (B=300, bf16)"

    # Check 3: exact f32 matmul path + non-binary task, tight tolerance.
    out3 = jax.block_until_ready(
        tower_forward(x2, w1, b1, w2, b2, task_type="regression",
                      matmul_dtype=jnp.float32))
    ref3 = tower_reference(x2, w1, b1, w2, b2, task_type="regression")
    assert jnp.allclose(out3, ref3, atol=1e-5, rtol=1e-5), "mismatch vs reference (f32 exact)"

    print("KERNEL_OK")
</pallas_src>

<mosaic_0001>
module attributes {stable_mosaic.version = 11 : i64} {
  func.func @_tower_kernel(%arg0: i32, %arg1: memref<8x32xf32, #tpu.memory_space<vmem>>, %arg2: memref<32x16xf32, #tpu.memory_space<vmem>>, %arg3: memref<1x16xf32, #tpu.memory_space<vmem>>, %arg4: memref<16x4xf32, #tpu.memory_space<vmem>>, %arg5: memref<1x4xf32, #tpu.memory_space<vmem>>, %arg6: memref<8x4xf32, #tpu.memory_space<vmem>>) attributes {dimension_semantics = [#tpu.dimension_semantics<parallel>], iteration_bounds = array<i64: 2>, scalar_prefetch = 0 : i64, scratch_operands = 0 : i64, tpu.core_type = #tpu.core_type<tc>, window_params = [{transform_indices = @transform_0, window_bounds = array<i64: 8, 32>}, {pipeline_mode = #tpu.pipeline_mode<synchronous>, transform_indices = @transform_1, window_bounds = array<i64: 32, 16>}, {pipeline_mode = #tpu.pipeline_mode<synchronous>, transform_indices = @transform_2, window_bounds = array<i64: 1, 16>}, {pipeline_mode = #tpu.pipeline_mode<synchronous>, transform_indices = @transform_3, window_bounds = array<i64: 16, 4>}, {pipeline_mode = #tpu.pipeline_mode<synchronous>, transform_indices = @transform_4, window_bounds = array<i64: 1, 4>}, {transform_indices = @transform_5, window_bounds = array<i64: 8, 4>}]} {
    %c0 = arith.constant 0 : index
    %c0_0 = arith.constant 0 : index
    %0 = vector.load %arg1[%c0, %c0_0] : memref<8x32xf32, #tpu.memory_space<vmem>>, vector<8x32xf32>
    %1 = arith.truncf %0 : vector<8x32xf32> to vector<8x32xbf16>
    %c0_1 = arith.constant 0 : index
    %c0_2 = arith.constant 0 : index
    %2 = vector.load %arg2[%c0_1, %c0_2] : memref<32x16xf32, #tpu.memory_space<vmem>>, vector<32x16xf32>
    %3 = arith.truncf %2 : vector<32x16xf32> to vector<32x16xbf16>
    %cst = arith.constant dense<0.000000e+00> : vector<8x16xf32>
    %4 = tpu.matmul %1, %3, %cst {dimension_numbers = #tpu.dot_dimension_numbers<[1], [0], [0], [1], [0, 0, 1, 1], [], []>} : vector<8x32xbf16>, vector<32x16xbf16>, vector<8x16xf32> -> vector<8x16xf32>
    %c0_3 = arith.constant 0 : index
    %c0_4 = arith.constant 0 : index
    %5 = vector.load %arg3[%c0_3, %c0_4] : memref<1x16xf32, #tpu.memory_space<vmem>>, vector<1x16xf32>
    %6 = vector.broadcast %5 : vector<1x16xf32> to vector<8x16xf32>
    %7 = arith.addf %4, %6 : vector<8x16xf32>
    %cst_5 = arith.constant 0.000000e+00 : f32
    %8 = vector.broadcast %cst_5 : f32 to vector<8x16xf32>
    %9 = arith.maximumf %7, %8 : vector<8x16xf32>
    %10 = arith.truncf %9 : vector<8x16xf32> to vector<8x16xbf16>
    %c0_6 = arith.constant 0 : index
    %c0_7 = arith.constant 0 : index
    %11 = vector.load %arg4[%c0_6, %c0_7] : memref<16x4xf32, #tpu.memory_space<vmem>>, vector<16x4xf32>
    %12 = arith.truncf %11 : vector<16x4xf32> to vector<16x4xbf16>
    %cst_8 = arith.constant dense<0.000000e+00> : vector<8x4xf32>
    %13 = tpu.matmul %10, %12, %cst_8 {dimension_numbers = #tpu.dot_dimension_numbers<[1], [0], [0], [1], [0, 0, 1, 1], [], []>} : vector<8x16xbf16>, vector<16x4xbf16>, vector<8x4xf32> -> vector<8x4xf32>
    %c0_9 = arith.constant 0 : index
    %c0_10 = arith.constant 0 : index
    %14 = vector.load %arg5[%c0_9, %c0_10] : memref<1x4xf32, #tpu.memory_space<vmem>>, vector<1x4xf32>
    %15 = vector.broadcast %14 : vector<1x4xf32> to vector<8x4xf32>
    %16 = arith.addf %13, %15 : vector<8x4xf32>
    %17 = arith.negf %16 : vector<8x4xf32>
    %18 = math.exp %17 : vector<8x4xf32>
    %cst_11 = arith.constant 1.000000e+00 : f32
    %19 = vector.broadcast %cst_11 : f32 to vector<8x4xf32>
    %20 = arith.addf %19, %18 : vector<8x4xf32>
    %21 = arith.divf %19, %20 : vector<8x4xf32>
    %c0_12 = arith.constant 0 : index
    %c0_13 = arith.constant 0 : index
    %22 = vector.load %arg6[%c0_12, %c0_13] : memref<8x4xf32, #tpu.memory_space<vmem>>, vector<8x4xf32>
    tpu.vector_store %arg6[%c0_12, %c0_13], %21 {strides = array<i32>} : memref<8x4xf32, #tpu.memory_space<vmem>>, vector<8x4xf32>,
    return
  }
  func.func @transform_0(%arg0: i32) -> (i32, i32) {
    %c0_i32 = arith.constant 0 : i32
    %c0_i32_0 = arith.constant 0 : i32
    return %arg0, %c0_i32 : i32, i32
  }
  func.func @transform_1(%arg0: i32) -> (i32, i32) {
    %c0_i32 = arith.constant 0 : i32
    %c0_i32_0 = arith.constant 0 : i32
    %c0_i32_1 = arith.constant 0 : i32
    return %c0_i32, %c0_i32_0 : i32, i32
  }
  func.func @transform_2(%arg0: i32) -> (i32, i32) {
    %c0_i32 = arith.constant 0 : i32
    %c0_i32_0 = arith.constant 0 : i32
    %c0_i32_1 = arith.constant 0 : i32
    return %c0_i32, %c0_i32_0 : i32, i32
  }
  func.func @transform_3(%arg0: i32) -> (i32, i32) {
    %c0_i32 = arith.constant 0 : i32
    %c0_i32_0 = arith.constant 0 : i32
    %c0_i32_1 = arith.constant 0 : i32
    return %c0_i32, %c0_i32_0 : i32, i32
  }
  func.func @transform_4(%arg0: i32) -> (i32, i32) {
    %c0_i32 = arith.constant 0 : i32
    %c0_i32_0 = arith.constant 0 : i32
    %c0_i32_1 = arith.constant 0 : i32
    return %c0_i32, %c0_i32_0 : i32, i32
  }
  func.func @transform_5(%arg0: i32) -> (i32, i32) {
    %c0_i32 = arith.constant 0 : i32
    %c0_i32_0 = arith.constant 0 : i32
    return %arg0, %c0_i32 : i32, i32
  }
}

</mosaic_0001>

<bundles_post_ra>
// kernel: tpu_custom_call.1
= control target key start
LH: loop header
LB: loop body
LE: loop exit
PB: predicated region body
PF: predicated region fallthrough
CT: control target
= control target key end

     0   :  { %s484_s18 = smov 0   ;;  %s532_s0 = inlined_call_operand.vmem [shape: f32[16,32], index: 0, kind: input, shape index: {}]   ;;  %s533_s1 = inlined_call_operand.vmem [shape: f32[32,16], index: 1, kind: input, shape index: {}]   ;;  %s534_s2 = inlined_call_operand.vmem [shape: f32[1,16], index: 2, kind: input, shape index: {}]   ;;  %s535_s3 = inlined_call_operand.vmem [shape: f32[16,4], index: 3, kind: input, shape index: {}]   ;;  %s536_s4 = inlined_call_operand.vmem [shape: f32[1,4], index: 4, kind: input, shape index: {}]   ;;  %s537_s5 = inlined_call_operand.vmem [shape: f32[16,4], index: 5, kind: output, shape index: {}]  }
   0x1 LB: > { %s397_s19 = sadd.s32 4294967295, %s450_s18   ;;  %p401_p0 = scmp.ge.s32.totalorder %s450_s18, 1  ;;  %s450_s18 = sphi %s484_s18, %s15_s18  }
   0x2   : > { %p186_p1 = scmp.lt.s32.totalorder %s450_s18, 3 }
   0x4   : > { %p187_p2 = pnand %p401_p0, %p186_p1 }
   0x5   : > { %v223_v0 = vld [vmem:[%s533_s1] sm:$0xff] (!%p187_p2)  ;;  %v224_v1 = vld [vmem:[%s533_s1 + $0x8] sm:$0xff] (!%p187_p2)  ;;  %v225_v2 = vld [vmem:[%s533_s1 + $0x10] sm:$0xff] (!%p187_p2)  ;;  %p212_p3 = scmp.lt.s32.totalorder (!%p187_p2), %s397_s19, 1  ;;  %v452_v3 = vmov (!%p187_p2), 0.0   ;;  %vm453_vm0 = vmmov (!%p187_p2), 0  }
   0x6   : > { %190 = sbr.rel (%p187_p2) target bundleno = 478 (0x1de), region = 40  ;;  %416 = vmatprep.subr.bf16.mxu0 (!%p187_p2), %v452_v3  ;;  %v227_v4 = vpack.c.bf16 (!%p187_p2), %v224_v1, %v223_v0  ;;  %v226_v5 = vld [vmem:[%s533_s1 + $0x18] sm:$0xff] (!%p187_p2)  ;;  %420 = vmatprep.mubr.msk.bf16.mxu0 (!%p187_p2), %vm453_vm0, %v452_v3  ;;  %vm236_vm1 = vcmask (!%p187_p2), 261120   ;;  %v282_v9 = vld [vmem:[%s535_s3] sm:$0xff] (!%p187_p2)  ;;  %v283_v10 = vld [vmem:[%s535_s3 + $0x8] sm:$0xff] (!%p187_p2)  ;;  %vm292_vm2 = vcmask (!%p187_p2), 130048  }
   0x7   : > { %424 = vmatprep.subr.bf16.mxu1 (!%p187_p2), %v452_v3  ;;  %426 = vmatprep.mubr.msk.bf16.mxu1 (!%p187_p2), %vm453_vm0, %v452_v3  ;;  %v228_v6 = vpack.c.bf16 (!%p187_p2), %v226_v5, %v225_v2  ;;  %v284_v11 = vpack.c.bf16 (!%p187_p2), %v283_v10, %v282_v9  ;;  %v404_v12 = vld [vmem:[%s534_s2] ss:$0 sm:$0xff] (!%p187_p2)  ;;  %vm342_vm3 = vcmask (!%p187_p2), 31744  }
   0x8   : > { %417 = vmatpush3.bf16.msra.mxu0 (!%p187_p2), %v227_v4  ;;  %v406_v20 = vld [vmem:[%s536_s4] ss:$0 sm:$0xff] (!%p187_p2) }
   0x9   : > { %418 = vmatprep.subr.bf16.mxu0 (!%p187_p2), %v452_v3  ;;  %425 = vmatpush3.bf16.msra.mxu1 (!%p187_p2), %v284_v11 }
   0xc   : > { %419 = vmatpush3.bf16.msra.mxu0 (!%p187_p2), %v228_v6 }
   0xd   : > { %s539_s19 = smov (!%p212_p3, %s397_s19), 1 }
   0xe   : > { %s402_s28 = sshll.u32 %s539_s19, 3 }
   0xf   : > { %s215_s6 = scalar_lea.vmem %s532_s0, %s402_s28  ;;  %s219_s17 = scalar_lea.vmem %s537_s5, %s402_s28 }
  0x10   : > { %v221_v7 = vld [vmem:[%s215_s6] sm:$0xff] }
  0x11   : > { %v222_v8 = vpack.c.bf16 %v221_v7, %v221_v7 }
  0x13   : > { %421 = vmatmul.mubr.msk.bf16.vlgmr.msra.gmra.mrb[0].mxu0 %vm236_vm1, %v222_v8 }
  0xe6   : > { %v274_v13 = vpop.f32.mrb[0].mxu0 }
  0xe7   : > { %v275_v14 = vadd.f32 %v404_v12, %v274_v13  ;;  %v422_v15 = vpop.f32.mrb[1].mxu0 }
  0xe8   : > { %v277_v16 = vpop.f32.mrb[2].mxu0 }
  0xe9   : > { %v280_v17 = vmax.f32 %v275_v14, 0.0  ;;  %v423_v18 = vpop.f32.mrb[3].mxu0 }
  0xeb   : > { %v281_v19 = vpack.c.bf16 %v280_v17, %v280_v17 }
  0xed   : > { %427 = vmatmul.mubr.msk.bf16.vlgmr.msra.gmra.mrb[0].mxu1 %vm292_vm2, %v281_v19 }
 0x1c0   : > { %v330_v21 = vpop.f32.mrb[0].mxu1 }
 0x1c1   : > { %v331_v22 = vadd.f32 %v406_v20, %v330_v21  ;;  %v428_v23 = vpop.f32.mrb[1].mxu1 }
 0x1c2   : > { %v333_v24 = vpop.f32.mrb[2].mxu1 }
 0x1c3   : > { %v408_v25 = vmul.f32 -1.442695, %v331_v22  ;;  %v429_v26 = vpop.f32.mrb[3].mxu1 }
 0x1c5   : > { %440 = vpow2.f32 %v408_v25 }
 0x1cf   : > { %v441_v27 = vpop.eup %440 }
 0x1d0   : > { %v339_v28 = vadd.f32 1.0, %v441_v27 }
 0x1d2   : > { %442 = vrcp.f32 %v339_v28 }
 0x1dc   : > { %v443_v29 = vpop.eup %442 }
 0x1dd   : > { %343 = vst.msk [vmem:[%s219_s17] sm:$0xff] %vm342_vm3, %v443_v29 }
 0x1de PF: > { %s15_s18 = sadd.s32 1, %s450_s18  }
 0x1df   : > { %p12_p4 = scmp.ge.s32.totalorder %s15_s18, 4  }
 0x1e1   :  { %14 = sbr.rel (!%p12_p4) target bundleno = 1 (0x1), region = 70 }

</bundles_post_ra>
